<compile_context>
chip_gen: v7x
topology: tpu7x:2x2x1
jax: 0.10.0
libtpu: 0.0.40
codegen_flags: <defaults>
</compile_context>

<pallas_src>
import functools

import jax
import jax.numpy as jnp
from jax import lax
from jax.experimental import pallas as pl
from jax.experimental.pallas import tpu as pltpu

EPS = 1e-6


def _round_up(x, m):
    return (x + m - 1) // m * m


def _combined_loss_kernel(x_ref, t_ref, out_ref,
                          acc_focal, acc_inter, acc_denom,
                          *, num_classes, num_pixels, hw, tile, chunk, gamma, mask_needed):
    b = pl.program_id(0)   # batch element
    j = pl.program_id(1)   # pixel tile

    @pl.when((b == 0) & (j == 0))
    def _():
        acc_focal[...] = jnp.zeros_like(acc_focal)
        acc_inter[...] = jnp.zeros_like(acc_inter)
        acc_denom[...] = jnp.zeros_like(acc_denom)

    n_chunks = tile // chunk
    n_fold = chunk // 128

    def fold128(a):
        # (rows, chunk) -> (rows, 128) by vreg-aligned lane-block adds (pure VPU, no XLU).
        out = a[:, 0:128]
        for kk in range(1, n_fold):
            out = out + a[:, kk * 128:(kk + 1) * 128]
        return out

    # Hoisted iotas (JAX does not CSE broadcast_in_dim inside the loop).
    cls = lax.broadcasted_iota(jnp.int32, (num_classes, chunk), 0)          # (C, chunk)
    if mask_needed:
        lane_base = lax.broadcasted_iota(jnp.int32, (1, chunk), 1) + j * tile  # (1, chunk)

    def chunk_body(k, carry):
        f_acc, i_acc, d_acc = carry
        start = pl.multiple_of(k * chunk, 128)
        x = x_ref[:, pl.ds(start, chunk)].astype(jnp.float32)   # (C, chunk)
        t = t_ref[:, pl.ds(start, chunk)].astype(jnp.int32)     # (1, chunk)

        if mask_needed:
            valid_b = (lane_base + start) < hw                   # (1, chunk) bool
            valid = valid_b.astype(jnp.float32)
            # Sanitize garbage out-of-bounds lanes BEFORE exp (NaN/Inf safety, no padding).
            x = jnp.where(valid_b, x, 0.0)
            # Remap padded targets to an out-of-range class -> one-hot is all zero.
            t = jnp.where(valid_b, t, num_classes)

        # Numerically stable softmax over the class (sublane) axis.
        m = jnp.max(x, axis=0, keepdims=True)                    # (1, chunk)  XLU
        e = jnp.exp(x - m)                                       # (C, chunk)  EUP
        s = jnp.sum(e, axis=0, keepdims=True)                    # (1, chunk)  XLU
        r = pl.reciprocal(s, approx=True)                        # EUP slot
        inv_s = r * (2.0 - s * r)                                 # one Newton step (1, chunk)
        if mask_needed:
            inv_s = inv_s * valid                                 # zero softmax in dead lanes
        softmax = e * inv_s                                       # (C, chunk)  VPU

        onehot = (cls == t).astype(jnp.float32)                   # (C, chunk)

        # Cross entropy per pixel: logsumexp(x) - x[target].
        logit_t = jnp.sum(x * onehot, axis=0, keepdims=True)      # (1, chunk)
        ce = (m + jnp.log(s)) - logit_t                           # (1, chunk), >= 0
        if mask_needed:
            ce = ce * valid         # dead lanes: ce=0 -> pt=1 -> focal=0 (no extra mask)
        pt = jnp.exp(-ce)           # (1, chunk) single EUP op (replaces (C,T) mul + reduce)
        q = 1.0 - pt
        mod = q * q if gamma == 2.0 else q ** gamma
        focal = mod * ce                                          # (1, chunk)
        # TODO(synk): per-class alpha weighting (BalancedFocalLoss.alpha) not implemented;
        # module default alpha=None (uniform weights) is what this kernel computes.

        f_acc = f_acc + fold128(focal)
        i_acc = i_acc + fold128(softmax * onehot)
        d_acc = d_acc + fold128(softmax + onehot)
        return f_acc, i_acc, d_acc

    init = (jnp.zeros((1, 128), jnp.float32),
            jnp.zeros((num_classes, 128), jnp.float32),
            jnp.zeros((num_classes, 128), jnp.float32))
    f_part, i_part, d_part = lax.fori_loop(0, n_chunks, chunk_body, init, unroll=True)

    # Single accumulator RMW per grid step (scratch is only (C,128)/(1,128)).
    acc_focal[...] += f_part
    acc_inter[...] += i_part
    acc_denom[...] += d_part

    @pl.when((b == pl.num_programs(0) - 1) & (j == pl.num_programs(1) - 1))
    def _():
        focal_mean = jnp.sum(acc_focal[...]) / num_pixels
        inter = jnp.sum(acc_inter[...], axis=1, keepdims=True)    # (C, 1)
        denom = jnp.sum(acc_denom[...], axis=1, keepdims=True)    # (C, 1)
        union = denom - inter
        iou = (inter + EPS) / (union + EPS)
        loss = focal_mean + 1.0 - jnp.mean(iou)
        out_ref[...] = loss.reshape(1, 1)


def combined_loss(inputs_nchw, targets_nhw, *, gamma=2.0, chunk=256, max_chunks_per_tile=8):
    """inputs_nchw: (N, C, H, W) float logits; targets_nhw: (N, H, W) int class ids."""
    n, c, h, w = inputs_nchw.shape
    hw = h * w

    # Inner sub-chunk width: multiple of 128 lanes, not larger than the (128-rounded) pixel count.
    chunk = _round_up(min(int(chunk), _round_up(hw, 128)), 128)

    # Free reshape (no transpose, no dtype change): classes contiguous, pixels last.
    # bf16 logits / narrow int targets pass straight through; the kernel upcasts in-register.
    logits = inputs_nchw.reshape(n, c, hw)
    targets = targets_nhw.reshape(n, 1, hw)

    # Tiny guard-pad only if fewer pixels than one chunk (keeps block <= array dims).
    hw_arr = hw
    if hw < chunk:
        pad = chunk - hw
        logits = jnp.pad(logits, ((0, 0), (0, 0), (0, pad)))
        targets = jnp.pad(targets, ((0, 0), (0, 0), (0, pad)), constant_values=c)
        hw_arr = chunk

    # Grid tile = a few chunks for DMA amortization; last block may overhang (masked in-kernel).
    tile = chunk * max(1, min(int(max_chunks_per_tile), hw_arr // chunk))
    grid_j = pl.cdiv(hw_arr, tile)
    mask_needed = (grid_j * tile) != hw

    kernel = functools.partial(
        _combined_loss_kernel,
        num_classes=c, num_pixels=float(n * hw), hw=hw,
        tile=tile, chunk=chunk, gamma=float(gamma), mask_needed=mask_needed)

    out = pl.pallas_call(
        kernel,
        out_shape=jax.ShapeDtypeStruct((1, 1), jnp.float32),
        grid_spec=pltpu.PrefetchScalarGridSpec(
            num_scalar_prefetch=0,
            grid=(n, grid_j),
            in_specs=[
                pl.BlockSpec((None, c, tile), lambda b, j: (b, 0, j)),
                pl.BlockSpec((None, 1, tile), lambda b, j: (b, 0, j)),
            ],
            out_specs=pl.BlockSpec((1, 1), lambda b, j: (0, 0)),
            scratch_shapes=[
                pltpu.VMEM((1, 128), jnp.float32),   # per-lane focal partial sums
                pltpu.VMEM((c, 128), jnp.float32),   # per-class, per-lane intersection
                pltpu.VMEM((c, 128), jnp.float32),   # per-class, per-lane sum(softmax + onehot)
            ],
        ),
        compiler_params=pltpu.CompilerParams(
            dimension_semantics=("arbitrary", "arbitrary"),
        ),
    )(logits, targets)
    return out[0, 0]


def combined_loss_reference(inputs_nchw, targets_nhw, *, gamma=2.0):
    n, c, h, w = inputs_nchw.shape
    logits = jnp.transpose(inputs_nchw, (0, 2, 3, 1)).reshape(-1, c).astype(jnp.float32)
    t = targets_nhw.reshape(-1)
    logp = jax.nn.log_softmax(logits, axis=-1)
    ce = -jnp.take_along_axis(logp, t[:, None], axis=-1)[:, 0]
    pt = jnp.exp(-ce)
    focal = jnp.mean(((1.0 - pt) ** gamma) * ce)
    sm = jax.nn.softmax(logits, axis=-1)
    oh = jax.nn.one_hot(t, c, dtype=jnp.float32)
    inter = jnp.sum(sm * oh, axis=0)
    union = jnp.sum(sm + oh, axis=0) - inter
    iou = (inter + EPS) / (union + EPS)
    return focal + 1.0 - jnp.mean(iou)


if __name__ == "__main__":
    # CombinedLoss defaults: alpha=None, gamma=2, reduction='mean', num_classes=25.
    N, C, H, W = 2, 25, 16, 16
    key = jax.random.PRNGKey(0)
    k_x, k_t = jax.random.split(key)
    inputs = jax.random.normal(k_x, (N, C, H, W), dtype=jnp.float32)
    targets = jax.random.randint(k_t, (N, H, W), 0, C, dtype=jnp.int32)

    loss = combined_loss(inputs, targets, gamma=2.0)
    loss = jax.block_until_ready(loss)

    ref = combined_loss_reference(inputs, targets, gamma=2.0)
    assert jnp.allclose(loss, ref, rtol=1e-4, atol=1e-5), (loss, ref)

    print("KERNEL_OK")
</pallas_src>

<mosaic_0001>
module attributes {stable_mosaic.version = 11 : i64} {
  func.func @_combined_loss_kernel(%arg0: i32, %arg1: i32, %arg2: memref<1x25x256xf32, #tpu.memory_space<vmem>>, %arg3: memref<1x1x256xi32, #tpu.memory_space<vmem>>, %arg4: memref<1x1xf32, #tpu.memory_space<vmem>>, %arg5: memref<1x128xf32, #tpu.memory_space<vmem>>, %arg6: memref<25x128xf32, #tpu.memory_space<vmem>>, %arg7: memref<25x128xf32, #tpu.memory_space<vmem>>) attributes {dimension_semantics = [#tpu.dimension_semantics<arbitrary>, #tpu.dimension_semantics<arbitrary>], iteration_bounds = array<i64: 2, 1>, scalar_prefetch = 0 : i64, scratch_operands = 3 : i64, tpu.core_type = #tpu.core_type<tc>, window_params = [{transform_indices = @transform_0, window_bounds = array<i64: 1, 25, 256>}, {transform_indices = @transform_1, window_bounds = array<i64: 1, 1, 256>}, {pipeline_mode = #tpu.pipeline_mode<synchronous>, transform_indices = @transform_2, window_bounds = array<i64: 1, 1>}]} {
    %c0_i32 = arith.constant 0 : i32
    %0 = arith.cmpi eq, %arg0, %c0_i32 : i32
    %c0_i32_0 = arith.constant 0 : i32
    %1 = arith.cmpi eq, %arg1, %c0_i32_0 : i32
    %2 = arith.andi %0, %1 : i1
    %3 = arith.extui %2 : i1 to i32
    %c0_i32_1 = arith.constant 0 : i32
    %4 = arith.cmpi ne, %3, %c0_i32_1 : i32
    scf.if %4 {
      %cst_29 = arith.constant 0.000000e+00 : f32
      %76 = vector.broadcast %cst_29 : f32 to vector<1x128xf32>
      %c0_30 = arith.constant 0 : index
      %c0_31 = arith.constant 0 : index
      %77 = vector.load %arg5[%c0_30, %c0_31] : memref<1x128xf32, #tpu.memory_space<vmem>>, vector<1x128xf32>
      tpu.vector_store %arg5[%c0_30, %c0_31], %76 {strides = array<i32>} : memref<1x128xf32, #tpu.memory_space<vmem>>, vector<1x128xf32>,
      %cst_32 = arith.constant 0.000000e+00 : f32
      %78 = vector.broadcast %cst_32 : f32 to vector<25x128xf32>
      %c0_33 = arith.constant 0 : index
      %c0_34 = arith.constant 0 : index
      %79 = vector.load %arg6[%c0_33, %c0_34] : memref<25x128xf32, #tpu.memory_space<vmem>>, vector<25x128xf32>
      tpu.vector_store %arg6[%c0_33, %c0_34], %78 {strides = array<i32>} : memref<25x128xf32, #tpu.memory_space<vmem>>, vector<25x128xf32>,
      %cst_35 = arith.constant 0.000000e+00 : f32
      %80 = vector.broadcast %cst_35 : f32 to vector<25x128xf32>
      %c0_36 = arith.constant 0 : index
      %c0_37 = arith.constant 0 : index
      %81 = vector.load %arg7[%c0_36, %c0_37] : memref<25x128xf32, #tpu.memory_space<vmem>>, vector<25x128xf32>
      tpu.vector_store %arg7[%c0_36, %c0_37], %80 {strides = array<i32>} : memref<25x128xf32, #tpu.memory_space<vmem>>, vector<25x128xf32>,
    } else {
    }
    %5 = tpu.iota {dimensions = array<i32: 0>} : vector<25x256xi32>
    %cst = arith.constant 0.000000e+00 : f32
    %6 = vector.broadcast %cst : f32 to vector<1x128xf32>
    %cst_2 = arith.constant 0.000000e+00 : f32
    %7 = vector.broadcast %cst_2 : f32 to vector<25x128xf32>
    %cst_3 = arith.constant 0.000000e+00 : f32
    %8 = vector.broadcast %cst_3 : f32 to vector<25x128xf32>
    %c0_i32_4 = arith.constant 0 : i32
    %c256_i32 = arith.constant 256 : i32
    %9 = arith.muli %c0_i32_4, %c256_i32 : i32
    %10 = tpu.assume_multiple %9, 128 : i32
    %c0 = arith.constant 0 : index
    %c0_5 = arith.constant 0 : index
    %11 = arith.index_cast %10 : i32 to index
    %12 = vector.load %arg2[%c0, %c0_5, %11] : memref<1x25x256xf32, #tpu.memory_space<vmem>>, vector<1x25x256xf32>
    %13 = vector.shape_cast %12 : vector<1x25x256xf32> to vector<25x256xf32>
    %c0_6 = arith.constant 0 : index
    %c0_7 = arith.constant 0 : index
    %14 = arith.index_cast %10 : i32 to index
    %15 = vector.load %arg3[%c0_6, %c0_7, %14] : memref<1x1x256xi32, #tpu.memory_space<vmem>>, vector<1x1x256xi32>
    %16 = vector.shape_cast %15 : vector<1x1x256xi32> to vector<1x256xi32>
    %cst_8 = arith.constant dense<0xFF800000> : vector<256xf32>
    %17 = vector.multi_reduction <maximumf>, %13, %cst_8 [0] : vector<25x256xf32> to vector<256xf32>
    %18 = vector.shape_cast %17 : vector<256xf32> to vector<1x256xf32>
    %19 = vector.broadcast %18 : vector<1x256xf32> to vector<25x256xf32>
    %20 = arith.subf %13, %19 : vector<25x256xf32>
    %21 = math.exp %20 : vector<25x256xf32>
    %cst_9 = arith.constant dense<0.000000e+00> : vector<256xf32>
    %22 = vector.multi_reduction <add>, %21, %cst_9 [0] : vector<25x256xf32> to vector<256xf32>
    %23 = vector.shape_cast %22 : vector<256xf32> to vector<1x256xf32>
    %24 = tpu.reciprocal %23 {approx = true} : vector<1x256xf32> -> vector<1x256xf32>
    %25 = arith.mulf %23, %24 : vector<1x256xf32>
    %cst_10 = arith.constant 2.000000e+00 : f32
    %26 = vector.broadcast %cst_10 : f32 to vector<1x256xf32>
    %27 = arith.subf %26, %25 : vector<1x256xf32>
    %28 = arith.mulf %24, %27 : vector<1x256xf32>
    %29 = vector.broadcast %28 : vector<1x256xf32> to vector<25x256xf32>
    %30 = arith.mulf %21, %29 : vector<25x256xf32>
    %31 = vector.broadcast %16 : vector<1x256xi32> to vector<25x256xi32>
    %32 = arith.cmpi eq, %5, %31 : vector<25x256xi32>
    %33 = arith.extui %32 : vector<25x256xi1> to vector<25x256xi32>
    %34 = arith.sitofp %33 : vector<25x256xi32> to vector<25x256xf32>
    %35 = arith.mulf %13, %34 : vector<25x256xf32>
    %cst_11 = arith.constant dense<0.000000e+00> : vector<256xf32>
    %36 = vector.multi_reduction <add>, %35, %cst_11 [0] : vector<25x256xf32> to vector<256xf32>
    %37 = vector.shape_cast %36 : vector<256xf32> to vector<1x256xf32>
    %38 = math.log %23 : vector<1x256xf32>
    %39 = arith.addf %18, %38 : vector<1x256xf32>
    %40 = arith.subf %39, %37 : vector<1x256xf32>
    %cst_12 = arith.constant 0.000000e+00 : f32
    %41 = vector.broadcast %cst_12 : f32 to vector<1x256xf32>
    %42 = arith.subf %41, %40 : vector<1x256xf32>
    %43 = math.exp %42 : vector<1x256xf32>
    %cst_13 = arith.constant 1.000000e+00 : f32
    %44 = vector.broadcast %cst_13 : f32 to vector<1x256xf32>
    %45 = arith.subf %44, %43 : vector<1x256xf32>
    %46 = arith.mulf %45, %45 : vector<1x256xf32>
    %47 = arith.mulf %46, %40 : vector<1x256xf32>
    %48 = vector.extract_strided_slice %47 {offsets = [0, 0], sizes = [1, 128], strides = [1, 1]} : vector<1x256xf32> to vector<1x128xf32>
    %49 = vector.extract_strided_slice %47 {offsets = [0, 128], sizes = [1, 128], strides = [1, 1]} : vector<1x256xf32> to vector<1x128xf32>
    %50 = arith.addf %48, %49 : vector<1x128xf32>
    %51 = arith.addf %6, %50 : vector<1x128xf32>
    %52 = arith.mulf %30, %34 : vector<25x256xf32>
    %53 = vector.extract_strided_slice %52 {offsets = [0, 0], sizes = [25, 128], strides = [1, 1]} : vector<25x256xf32> to vector<25x128xf32>
    %54 = vector.extract_strided_slice %52 {offsets = [0, 128], sizes = [25, 128], strides = [1, 1]} : vector<25x256xf32> to vector<25x128xf32>
    %55 = arith.addf %53, %54 : vector<25x128xf32>
    %56 = arith.addf %7, %55 : vector<25x128xf32>
    %57 = arith.addf %30, %34 : vector<25x256xf32>
    %58 = vector.extract_strided_slice %57 {offsets = [0, 0], sizes = [25, 128], strides = [1, 1]} : vector<25x256xf32> to vector<25x128xf32>
    %59 = vector.extract_strided_slice %57 {offsets = [0, 128], sizes = [25, 128], strides = [1, 1]} : vector<25x256xf32> to vector<25x128xf32>
    %60 = arith.addf %58, %59 : vector<25x128xf32>
    %61 = arith.addf %8, %60 : vector<25x128xf32>
    %c1_i32 = arith.constant 1 : i32
    %c0_14 = arith.constant 0 : index
    %c0_15 = arith.constant 0 : index
    %62 = vector.load %arg5[%c0_14, %c0_15] : memref<1x128xf32, #tpu.memory_space<vmem>>, vector<1x128xf32>
    %63 = arith.addf %62, %51 : vector<1x128xf32>
    %c0_16 = arith.constant 0 : index
    %c0_17 = arith.constant 0 : index
    %64 = vector.load %arg5[%c0_16, %c0_17] : memref<1x128xf32, #tpu.memory_space<vmem>>, vector<1x128xf32>
    tpu.vector_store %arg5[%c0_16, %c0_17], %63 {strides = array<i32>} : memref<1x128xf32, #tpu.memory_space<vmem>>, vector<1x128xf32>,
    %c0_18 = arith.constant 0 : index
    %c0_19 = arith.constant 0 : index
    %65 = vector.load %arg6[%c0_18, %c0_19] : memref<25x128xf32, #tpu.memory_space<vmem>>, vector<25x128xf32>
    %66 = arith.addf %65, %56 : vector<25x128xf32>
    %c0_20 = arith.constant 0 : index
    %c0_21 = arith.constant 0 : index
    %67 = vector.load %arg6[%c0_20, %c0_21] : memref<25x128xf32, #tpu.memory_space<vmem>>, vector<25x128xf32>
    tpu.vector_store %arg6[%c0_20, %c0_21], %66 {strides = array<i32>} : memref<25x128xf32, #tpu.memory_space<vmem>>, vector<25x128xf32>,
    %c0_22 = arith.constant 0 : index
    %c0_23 = arith.constant 0 : index
    %68 = vector.load %arg7[%c0_22, %c0_23] : memref<25x128xf32, #tpu.memory_space<vmem>>, vector<25x128xf32>
    %69 = arith.addf %68, %61 : vector<25x128xf32>
    %c0_24 = arith.constant 0 : index
    %c0_25 = arith.constant 0 : index
    %70 = vector.load %arg7[%c0_24, %c0_25] : memref<25x128xf32, #tpu.memory_space<vmem>>, vector<25x128xf32>
    tpu.vector_store %arg7[%c0_24, %c0_25], %69 {strides = array<i32>} : memref<25x128xf32, #tpu.memory_space<vmem>>, vector<25x128xf32>,
    %c1_i32_26 = arith.constant 1 : i32
    %71 = arith.cmpi eq, %arg0, %c1_i32_26 : i32
    %c0_i32_27 = arith.constant 0 : i32
    %72 = arith.cmpi eq, %arg1, %c0_i32_27 : i32
    %73 = arith.andi %71, %72 : i1
    %74 = arith.extui %73 : i1 to i32
    %c0_i32_28 = arith.constant 0 : i32
    %75 = arith.cmpi ne, %74, %c0_i32_28 : i32
    scf.if %75 {
      %c0_29 = arith.constant 0 : index
      %c0_30 = arith.constant 0 : index
      %76 = vector.load %arg5[%c0_29, %c0_30] : memref<1x128xf32, #tpu.memory_space<vmem>>, vector<1x128xf32>
      %77 = vector.shape_cast %76 : vector<1x128xf32> to vector<1x1x128xf32>
      %cst_31 = arith.constant dense<0.000000e+00> : vector<1xf32>
      %78 = vector.multi_reduction <add>, %77, %cst_31 [1, 2] : vector<1x1x128xf32> to vector<1xf32>
      %79 = vector.shape_cast %78 : vector<1xf32> to vector<1x1x1xf32>
      %80 = vector.extract %79[0, 0, 0] : f32 from vector<1x1x1xf32>
      %cst_32 = arith.constant 5.120000e+02 : f32
      %81 = arith.divf %80, %cst_32 : f32
      %c0_33 = arith.constant 0 : index
      %c0_34 = arith.constant 0 : index
      %82 = vector.load %arg6[%c0_33, %c0_34] : memref<25x128xf32, #tpu.memory_space<vmem>>, vector<25x128xf32>
      %cst_35 = arith.constant dense<0.000000e+00> : vector<25xf32>
      %83 = vector.multi_reduction <add>, %82, %cst_35 [1] : vector<25x128xf32> to vector<25xf32>
      %84 = vector.shape_cast %83 : vector<25xf32> to vector<25x1xf32>
      %c0_36 = arith.constant 0 : index
      %c0_37 = arith.constant 0 : index
      %85 = vector.load %arg7[%c0_36, %c0_37] : memref<25x128xf32, #tpu.memory_space<vmem>>, vector<25x128xf32>
      %cst_38 = arith.constant dense<0.000000e+00> : vector<25xf32>
      %86 = vector.multi_reduction <add>, %85, %cst_38 [1] : vector<25x128xf32> to vector<25xf32>
      %87 = vector.shape_cast %86 : vector<25xf32> to vector<25x1xf32>
      %88 = arith.subf %87, %84 : vector<25x1xf32>
      %cst_39 = arith.constant 9.99999997E-7 : f32
      %89 = vector.broadcast %cst_39 : f32 to vector<25x1xf32>
      %90 = arith.addf %84, %89 : vector<25x1xf32>
      %cst_40 = arith.constant 9.99999997E-7 : f32
      %91 = vector.broadcast %cst_40 : f32 to vector<25x1xf32>
      %92 = arith.addf %88, %91 : vector<25x1xf32>
      %93 = arith.divf %90, %92 : vector<25x1xf32>
      %cst_41 = arith.constant 1.000000e+00 : f32
      %94 = arith.addf %81, %cst_41 : f32
      %95 = vector.shape_cast %93 : vector<25x1xf32> to vector<1x25x1xf32>
      %cst_42 = arith.constant dense<0.000000e+00> : vector<1xf32>
      %96 = vector.multi_reduction <add>, %95, %cst_42 [1, 2] : vector<1x25x1xf32> to vector<1xf32>
      %97 = vector.shape_cast %96 : vector<1xf32> to vector<1x1x1xf32>
      %98 = vector.extract %97[0, 0, 0] : f32 from vector<1x1x1xf32>
      %cst_43 = arith.constant 2.500000e+01 : f32
      %99 = arith.divf %98, %cst_43 : f32
      %100 = arith.subf %94, %99 : f32
      %101 = vector.broadcast %100 : f32 to vector<1x1xf32>
      %c0_44 = arith.constant 0 : index
      %c0_45 = arith.constant 0 : index
      %102 = vector.load %arg4[%c0_44, %c0_45] : memref<1x1xf32, #tpu.memory_space<vmem>>, vector<1x1xf32>
      tpu.vector_store %arg4[%c0_44, %c0_45], %101 {strides = array<i32>} : memref<1x1xf32, #tpu.memory_space<vmem>>, vector<1x1xf32>,
    } else {
    }
    return
  }
  func.func @transform_0(%arg0: i32, %arg1: i32) -> (i32, i32, i32) {
    %c0_i32 = arith.constant 0 : i32
    %c0_i32_0 = arith.constant 0 : i32
    return %arg0, %c0_i32, %arg1 : i32, i32, i32
  }
  func.func @transform_1(%arg0: i32, %arg1: i32) -> (i32, i32, i32) {
    %c0_i32 = arith.constant 0 : i32
    %c0_i32_0 = arith.constant 0 : i32
    return %arg0, %c0_i32, %arg1 : i32, i32, i32
  }
  func.func @transform_2(%arg0: i32, %arg1: i32) -> (i32, i32) {
    %c0_i32 = arith.constant 0 : i32
    %c0_i32_0 = arith.constant 0 : i32
    %c0_i32_1 = arith.constant 0 : i32
    return %c0_i32, %c0_i32_0 : i32, i32
  }
}

</mosaic_0001>

<bundles_post_ra>
// kernel: tpu_custom_call.1
= control target key start
LH: loop header
LB: loop body
LE: loop exit
PB: predicated region body
PF: predicated region fallthrough
CT: control target
= control target key end

     0   :  { %7 = vsyncpa [#allocation6], 0  ;;  %s777_s9 = smov 0   ;;  %s779_s10 = smov 0   ;;  %s995_s0 = inlined_call_operand.vmem [shape: f32[2,25,256], index: 0, kind: input, shape index: {}]   ;;  %s996_s1 = inlined_call_operand.vmem [shape: s32[2,1,256], index: 1, kind: input, shape index: {}]   ;;  %s997_s2 = inlined_call_operand.hbm [shape: f32[1,1], index: 2, kind: output, shape index: {}]  }
   0x1   :  { %s781_s11 = smov 0  }
   0x2 LB: > { %s608_s12 = sadd.s32 4294967295, %s757_s11   ;;  %s25_s13 = sadd.s32 1, %s753_s10  ;;  %s757_s11 = sphi %s781_s11, %s13_s11   ;;  %s753_s10 = sphi %s779_s10, %s1000_s10   ;;  %s749_s9 = sphi %s777_s9, %s999_s9  }
   0x3   : > { %p27_p0 = scmp.ge.s32.totalorder %s25_s13, 2  ;;  %p611_p1 = scmp.ge.s32.totalorder %s757_s11, 1 }
   0x4   : > { %p143_p2 = scmp.lt.s32.totalorder %s757_s11, 3 }
   0x5   : > { %s1002_s13 = smov (%p27_p0, %s25_s13), 0 }
   0x6   : > { %p144_p3 = pnand %p611_p1, %p143_p2 }
   0x7   : > { %p173_p4 = scmp.lt.s32.totalorder (!%p144_p3), %s749_s9, 1  ;;  %p191_p5 = scmp.eq.s32.totalorder (!%p144_p3), %s749_s9, 0 }
   0x8   : > { %147 = sbr.rel (%p144_p3) target bundleno = 525 (0x20d), region = 28 }
   0xf   : > { %s174_s14 = scalar_select %p173_p4, %s749_s9, 1 }
  0x10   : > { %196 = sbr.rel (!%p191_p5) target bundleno = 23 (0x17), region = 32  ;;  %v759_v0 = vmov (%p191_p5), 0.0  }
  0x11   : > { %s629_s15 = sshll.u32 %s174_s14, 6  ;;  %s614_s16 = sshll.u32 %s174_s14, 1  ;;  %197 = vst [vmem:[#allocation2] sm:$0x1] (%p191_p5), %v759_v0  ;;  %198 = vst [vmem:[#allocation3] sm:$0xff] (%p191_p5), %v759_v0 }
  0x12   : > { %s180_s19 = scalar_lea.vmem %s995_s0, %s629_s15  ;;  %s807_s22 = scalar_lea.vmem %s996_s1, %s614_s16  ;;  %199 = vst [vmem:[#allocation3 + $0x8] sm:$0xff] (%p191_p5), %v759_v0  ;;  %200 = vst [vmem:[#allocation3 + $0x10] sm:$0xff] (%p191_p5), %v759_v0 }
  0x13   : > { %201 = vst [vmem:[#allocation3 + $0x18] sm:$0x1] (%p191_p5), %v759_v0  ;;  %202 = vst [vmem:[#allocation4] sm:$0xff] (%p191_p5), %v759_v0 }
  0x14   : > { %203 = vst [vmem:[#allocation4 + $0x8] sm:$0xff] (%p191_p5), %v759_v0  ;;  %204 = vst [vmem:[#allocation4 + $0x10] sm:$0xff] (%p191_p5), %v759_v0 }
  0x15   : > { %205 = vst [vmem:[#allocation4 + $0x18] sm:$0x1] (%p191_p5), %v759_v0 }
  0x17 PF: > { %v809_v1 = vld [vmem:[%s180_s19] sm:$0xff]  ;;  %v811_v2 = vld [vmem:[%s180_s19 + $0x8] sm:$0xff]  ;;  %vm221_vm0 = vcmask 1040384   ;;  %p442_p6 = scmp.eq.s32.totalorder %s749_s9, 1  ;;  %v814_v3 = vld [vmem:[%s180_s19 + $0x10] sm:$0xff]  ;;  %v206_v20 = vlaneseq  ;;  %v760_v55 = vmov 0.0  }
  0x18   : > { %v816_v4 = vld [vmem:[%s180_s19 + $0x20] sm:$0xff]  ;;  %v818_v5 = vld [vmem:[%s180_s19 + $0x28] sm:$0xff]  ;;  %v820_v6 = vld [vmem:[%s180_s19 + $0x18] sm:$0xff]  ;;  %vm508_vm9 = vcmask (%p442_p6), 7168   ;;  %vm514_vm10 = vcmask (%p442_p6), 0  }
  0x19   : > { %v822_v7 = vld [vmem:[%s180_s19 + $0x30] sm:$0x1]  ;;  %v824_v8 = vld [vmem:[%s180_s19 + $0x38] sm:$0x1]  ;;  %v220_v9 = vmax.f32 %v809_v1, %v816_v4  ;;  %v231_v11 = vmax.f32 %v811_v2, %v818_v5  ;;  %v207_v25 = vshrl.u32 %v206_v20, 7 }
  0x1a   : > { %v222_v10 = vsel %vm221_vm0, %v822_v7, -inf  ;;  %v232_v12 = vsel %vm221_vm0, %v824_v8, -inf  ;;  %v219_v32 = vld [vmem:[%s807_s22] sm:$0x3] }
  0x1b   : > { %v223_v13 = vmax.f32 %v814_v3, %v222_v10  ;;  %v233_v14 = vmax.f32 %v820_v6, %v232_v12  ;;  %v303_v31 = vsub.s32 0, %v207_v25  ;;  %v307_v36 = vsub.s32 1, %v207_v25 }
  0x1c   : > { %v208_v40 = vadd.s32 8, %v207_v25  ;;  %v209_v51 = vadd.s32 16, %v207_v25  ;;  %v210_v54 = vadd.s32 24, %v207_v25 }
  0x1d   : > { %v224_v15 = vmax.f32 %v220_v9, %v223_v13  ;;  %v234_v16 = vmax.f32 %v231_v11, %v233_v14  ;;  %v304_v47 = vrot.slane %v219_v32, %v303_v31  ;;  %v308_v49 = vrot.slane %v219_v32, %v307_v36 }
  0x1f   : > { %v225_v17 = vrot.slane %v224_v15, 4  ;;  %v235_v18 = vrot.slane %v234_v16, 4  ;;  %vm309_vm1 = vcmp.eq.s32.totalorder %v207_v25, %v304_v47  ;;  %vm311_vm2 = vcmp.eq.s32.totalorder %v208_v40, %v304_v47 }
  0x20   : > { %vm310_vm3 = vcmp.eq.s32.totalorder %v207_v25, %v308_v49  ;;  %vm312_vm4 = vcmp.eq.s32.totalorder %v208_v40, %v308_v49  ;;  %v857_v56 = vsel %vm309_vm1, 1.0, %v760_v55  ;;  %v859_v57 = vsel %vm311_vm2, 1.0, %v760_v55 }
  0x21   : > { %v226_v19 = vmax.f32 %v224_v15, %v225_v17  ;;  %v236_v21 = vmax.f32 %v234_v16, %v235_v18  ;;  %vm313_vm5 = vcmp.eq.s32.totalorder %v209_v51, %v304_v47  ;;  %v861_v58 = vsel %vm310_vm3, 1.0, %v760_v55 }
  0x22   : > { %v863_v59 = vsel %vm312_vm4, 1.0, %v760_v55  ;;  %vm314_vm6 = vcmp.eq.s32.totalorder %v209_v51, %v308_v49  ;;  %vm315_vm7 = vcmp.eq.s32.totalorder %v210_v54, %v304_v47  ;;  %vm316_vm8 = vcmp.eq.s32.totalorder %v210_v54, %v308_v49 }
  0x23   : > { %v227_v22 = vrot.slane %v226_v19, 2  ;;  %v237_v23 = vrot.slane %v236_v21, 2  ;;  %v333_v60 = vmul.f32 %v857_v56, %v809_v1  ;;  %v335_v61 = vmul.f32 %v859_v57, %v814_v3 }
  0x24   : > { %v871_v63 = vsel %vm313_vm5, 1.0, %v760_v55  ;;  %v334_v0 = vmul.f32 %v861_v58, %v811_v2  ;;  %v336_v9 = vmul.f32 %v863_v59, %v820_v6  ;;  %v879_v11 = vsel %vm314_vm6, 1.0, %v760_v55 }
  0x25   : > { %v228_v24 = vmax.f32 %v226_v19, %v227_v22  ;;  %v238_v26 = vmax.f32 %v236_v21, %v237_v23  ;;  %v881_v12 = vsel %vm315_vm7, 1.0, %v760_v55  ;;  %v885_v13 = vsel %vm316_vm8, 1.0, %v760_v55 }
  0x26   : > { %v341_v15 = vadd.f32 %v335_v61, %v333_v60  ;;  %v338_v17 = vmul.f32 %v879_v11, %v818_v5  ;;  %v339_v18 = vmul.f32 %v881_v12, %v822_v7  ;;  %v351_v19 = vadd.f32 %v336_v9, %v334_v0 }
  0x27   : > { %v229_v27 = vrot.slane %v228_v24, 1  ;;  %v239_v28 = vrot.slane %v238_v26, 1 }
  0x29   : > { %v836_v29 = vmax.f32 %v228_v24, %v229_v27  ;;  %v838_v30 = vmax.f32 %v238_v26, %v239_v28  ;;  %v343_v27 = vsel %vm221_vm0, %v339_v18, 0.0  ;;  %v352_v28 = vadd.f32 %v351_v19, %v338_v17 }
  0x2b   : > { %v241_v33 = vsub.f32 %v809_v1, %v836_v29  ;;  %v243_v34 = vsub.f32 %v814_v3, %v836_v29  ;;  %v245_v35 = vsub.f32 %v816_v4, %v836_v29  ;;  %v242_v37 = vsub.f32 %v811_v2, %v838_v30 }
  0x2c   : > { %v244_v38 = vsub.f32 %v820_v6, %v838_v30  ;;  %v246_v39 = vsub.f32 %v818_v5, %v838_v30  ;;  %v247_v41 = vsub.f32 %v822_v7, %v836_v29  ;;  %v248_v44 = vsub.f32 %v824_v8, %v838_v30 }
  0x2d   : > { %v249_v42 = vmul.f32 1.442695, %v241_v33  ;;  %v253_v43 = vmul.f32 1.442695, %v243_v34  ;;  %v251_v45 = vmul.f32 1.442695, %v242_v37  ;;  %v337_v2 = vmul.f32 %v871_v63, %v816_v4 }
  0x2e   : > { %v255_v46 = vmul.f32 1.442695, %v244_v38  ;;  %v257_v48 = vmul.f32 1.442695, %v245_v35  ;;  %v259_v50 = vmul.f32 1.442695, %v246_v39  ;;  %v340_v4 = vmul.f32 %v885_v13, %v824_v8 }
  0x2f   : > { %669 = vpow2.f32 %v249_v42  ;;  %v261_v52 = vmul.f32 1.442695, %v247_v41  ;;  %v263_v53 = vmul.f32 1.442695, %v248_v44  ;;  %v342_v25 = vadd.f32 %v341_v15, %v337_v2 }
  0x30   : > { %671 = vpow2.f32 %v251_v45  ;;  %v353_v8 = vsel %vm221_vm0, %v340_v4, 0.0 }
  0x31   : > { %673 = vpow2.f32 %v253_v43  ;;  %v344_v34 = vadd.f32 %v343_v27, %v342_v25  ;;  %v354_v36 = vadd.f32 %v353_v8, %v352_v28 }
  0x32   : > { %675 = vpow2.f32 %v255_v46 }
  0x33   : > { %677 = vpow2.f32 %v257_v48  ;;  %v345_v40 = vrot.slane %v344_v34, 4  ;;  %v355_v42 = vrot.slane %v354_v36, 4 }
  0x34   : > { %679 = vpow2.f32 %v259_v50 }
  0x35   : > { %681 = vpow2.f32 %v261_v52  ;;  %v346_v46 = vadd.f32 %v345_v40, %v344_v34  ;;  %v356_v48 = vadd.f32 %v355_v42, %v354_v36 }
  0x36   : > { %683 = vpow2.f32 %v263_v53 }
  0x37   : > { %v347_v50 = vrot.slane %v346_v46, 2  ;;  %v357_v51 = vrot.slane %v356_v48, 2 }
  0x39   : > { %v869_v62 = vpop.eup %669  ;;  %v348_v52 = vadd.f32 %v347_v50, %v346_v46  ;;  %v358_v53 = vadd.f32 %v357_v51, %v356_v48  ;;  %v430_v51 = vld [vmem:[#allocation4] sm:$0xff] }
  0x3a   : > { %v877_v10 = vpop.eup %671 }
  0x3b   : > { %v883_v1 = vpop.eup %673  ;;  %v349_v54 = vrot.slane %v348_v52, 1  ;;  %v359_v60 = vrot.slane %v358_v53, 1 }
  0x3c   : > { %v887_v3 = vpop.eup %675  ;;  %v265_v14 = vadd.f32 %v883_v1, %v869_v62 }
  0x3d   : > { %v893_v6 = vpop.eup %677  ;;  %v275_v16 = vadd.f32 %v887_v3, %v877_v10  ;;  %v350_v15 = vadd.f32 %v349_v54, %v348_v52  ;;  %v360_v18 = vadd.f32 %v359_v60, %v358_v53  ;;  %v431_v54 = vld [vmem:[#allocation4 + $0x8] sm:$0xff] }
  0x3e   : > { %v901_v20 = vpop.eup %679  ;;  %v266_v21 = vadd.f32 %v893_v6, %v265_v14 }
  0x3f   : > { %v906_v22 = vpop.eup %681  ;;  %v276_v23 = vadd.f32 %v901_v20, %v275_v16 }
  0x40   : > { %v909_v24 = vpop.eup %683  ;;  %v267_v5 = vsel %vm221_vm0, %v906_v22, 0.0 }
  0x41   : > { %v268_v26 = vadd.f32 %v267_v5, %v266_v21  ;;  %v277_v7 = vsel %vm221_vm0, %v909_v24, 0.0 }
  0x42   : > { %v278_v31 = vadd.f32 %v277_v7, %v276_v23 }
  0x43   : > { %v269_v32 = vrot.slane %v268_v26, 4 }
  0x44   : > { %v279_v33 = vrot.slane %v278_v31, 4 }
  0x45   : > { %v270_v35 = vadd.f32 %v269_v32, %v268_v26 }
  0x46   : > { %v280_v37 = vadd.f32 %v279_v33, %v278_v31 }
  0x47   : > { %v271_v38 = vrot.slane %v270_v35, 2 }
  0x48   : > { %v281_v39 = vrot.slane %v280_v37, 2 }
  0x49   : > { %v272_v41 = vadd.f32 %v271_v38, %v270_v35 }
  0x4a   : > { %v282_v43 = vadd.f32 %v281_v39, %v280_v37  ;;  %v419_v37 = vld [vmem:[#allocation3 + $0x8] sm:$0xff] }
  0x4b   : > { %v273_v44 = vrot.slane %v272_v41, 1 }
  0x4c   : > { %v283_v45 = vrot.slane %v282_v43, 1 }
  0x4d   : > { %v274_v47 = vadd.f32 %v273_v44, %v272_v41 }
  0x4e   : > { %v284_v49 = vadd.f32 %v283_v45, %v282_v43 }
  0x4f   : > { %685 = vrcp.f32 %v274_v47 }
  0x50   : > { %687 = vrcp.f32 %v284_v49 }
  0x51   : > { %689 = vlog2.f32 %v274_v47 }
  0x52   : > { %691 = vlog2.f32 %v284_v49 }
  0x59   : > { %v686_v55 = vpop.eup %685 }
  0x5a   : > { %v688_v61 = vpop.eup %687  ;;  %v287_v0 = vmul.f32 %v686_v55, %v274_v47 }
  0x5b   : > { %v690_v9 = vpop.eup %689  ;;  %v288_v14 = vmul.f32 %v688_v61, %v284_v49 }
  0x5c   : > { %v692_v2 = vpop.eup %691  ;;  %v362_v16 = vmul.f32 0.6931472, %v690_v9  ;;  %v289_v17 = vsub.f32 2.0, %v287_v0 }
  0x5d   : > { %v364_v19 = vmul.f32 0.6931472, %v692_v2  ;;  %v290_v21 = vsub.f32 2.0, %v288_v14  ;;  %v432_v2 = vld [vmem:[#allocation4 + $0x10] sm:$0xff] }
  0x5e   : > { %v365_v4 = vadd.f32 %v362_v16, %v836_v29  ;;  %v291_v23 = vmul.f32 %v686_v55, %v289_v17 }
  0x5f   : > { %v366_v5 = vadd.f32 %v364_v19, %v838_v30  ;;  %v292_v25 = vmul.f32 %v688_v61, %v290_v21 }
  0x60   : > { %v919_v26 = vsub.f32 %v365_v4, %v350_v15  ;;  %v293_v7 = vmul.f32 %v869_v62, %v291_v23  ;;  %v295_v27 = vmul.f32 %v883_v1, %v291_v23  ;;  %v297_v28 = vmul.f32 %v893_v6, %v291_v23  ;;  %v433_v15 = vld [vmem:[#allocation4 + $0x18] sm:$0x1] }
  0x61   : > { %v924_v31 = vsub.f32 %v366_v5, %v360_v18  ;;  %v294_v8 = vmul.f32 %v877_v10, %v292_v25  ;;  %v296_v32 = vmul.f32 %v887_v3, %v292_v25  ;;  %v298_v29 = vmul.f32 %v901_v20, %v292_v25  ;;  %v418_v3 = vld [vmem:[#allocation3] sm:$0xff]  ;;  %v420_v20 = vld [vmem:[#allocation3 + $0x10] sm:$0xff]  ;;  %v415_v5 = vld [vmem:[#allocation2] sm:$0x1] }
  0x62   : > { %v369_v33 = vsub.f32 0.0, %v919_v26  ;;  %v383_v30 = vmul.f32 %v857_v56, %v293_v7  ;;  %v385_v34 = vmul.f32 %v859_v57, %v295_v27  ;;  %v387_v62 = vmul.f32 %v871_v63, %v297_v28 }
  0x63   : > { %v370_v1 = vsub.f32 0.0, %v924_v31  ;;  %v384_v6 = vmul.f32 %v861_v58, %v294_v8  ;;  %v386_v35 = vmul.f32 %v863_v59, %v296_v32  ;;  %v388_v10 = vmul.f32 %v879_v11, %v298_v29 }
  0x64   : > { %v371_v36 = vmul.f32 1.442695, %v369_v33  ;;  %v299_v38 = vmul.f32 %v906_v22, %v291_v23  ;;  %v300_v39 = vmul.f32 %v909_v24, %v292_v25  ;;  %v399_v40 = vadd.f32 %v857_v56, %v293_v7  ;;  %v421_v22 = vld [vmem:[#allocation3 + $0x18] sm:$0x1] }
  0x65   : > { %v373_v41 = vmul.f32 1.442695, %v370_v1  ;;  %v391_v42 = vadd.f32 %v384_v6, %v383_v30  ;;  %v392_v43 = vadd.f32 %v386_v35, %v385_v34  ;;  %v393_v44 = vadd.f32 %v388_v10, %v387_v62 }
  0x66   : > { %693 = vpow2.f32 %v371_v36  ;;  %v389_v45 = vmul.f32 %v881_v12, %v299_v38  ;;  %v390_v46 = vmul.f32 %v885_v13, %v300_v39  ;;  %v400_v47 = vadd.f32 %v861_v58, %v294_v8 }
  0x67   : > { %695 = vpow2.f32 %v373_v41  ;;  %v422_v48 = vadd.f32 %v418_v3, %v391_v42  ;;  %v423_v49 = vadd.f32 %v419_v37, %v392_v43  ;;  %v424_v50 = vadd.f32 %v420_v20, %v393_v44 }
  0x68   : > { %v394_v24 = vadd.f32 %v390_v46, %v389_v45  ;;  %v407_v52 = vadd.f32 %v400_v47, %v399_v40  ;;  %v401_v56 = vadd.f32 %v859_v57, %v295_v27  ;;  %v402_v53 = vadd.f32 %v863_v59, %v296_v32 }
  0x69   : > { %426 = vst [vmem:[#allocation3] sm:$0xff] %v422_v48  ;;  %427 = vst [vmem:[#allocation3 + $0x8] sm:$0xff] %v423_v49  ;;  %v403_v55 = vadd.f32 %v871_v63, %v297_v28  ;;  %v404_v58 = vadd.f32 %v879_v11, %v298_v29  ;;  %v405_v60 = vadd.f32 %v881_v12, %v299_v38 }
  0x6a   : > { %428 = vst [vmem:[#allocation3 + $0x10] sm:$0xff] %v424_v50  ;;  %v406_v61 = vadd.f32 %v885_v13, %v300_v39  ;;  %v425_v0 = vadd.f32 %v421_v22, %v394_v24  ;;  %v434_v9 = vadd.f32 %v430_v51, %v407_v52  ;;  %v408_v14 = vadd.f32 %v402_v53, %v401_v56 }
  0x6b   : > { %v409_v57 = vadd.f32 %v404_v58, %v403_v55 }
  0x6c   : > { %v410_v16 = vadd.f32 %v406_v61, %v405_v60  ;;  %429 = vst [vmem:[#allocation3 + $0x18] sm:$0x1] %v425_v0  ;;  %438 = vst [vmem:[#allocation4] sm:$0xff] %v434_v9  ;;  %v435_v59 = vadd.f32 %v431_v54, %v408_v14 }
  0x6d   : > { %v436_v17 = vadd.f32 %v432_v2, %v409_v57 }
  0x6e   : > { %v437_v18 = vadd.f32 %v433_v15, %v410_v16  ;;  %439 = vst [vmem:[#allocation4 + $0x8] sm:$0xff] %v435_v59 }
  0x6f   : > { %440 = vst [vmem:[#allocation4 + $0x10] sm:$0xff] %v436_v17 }
  0x70   : > { %441 = vst [vmem:[#allocation4 + $0x18] sm:$0x1] %v437_v18  ;;  %v694_v63 = vpop.eup %693  ;;  %v461_v28 = vld [vmem:[#allocation3] sm:$0xff] (%p442_p6)  ;;  %v462_v32 = vld [vmem:[#allocation3 + $0x8] sm:$0xff] (%p442_p6) }
  0x71   : > { %v696_v11 = vpop.eup %695  ;;  %v375_v12 = vsub.f32 1.0, %v694_v63  ;;  %465 = vadd.xlane.f32.xlu0 (%p442_p6), %v461_v28  ;;  %v463_v33 = vld [vmem:[#allocation3 + $0x10] sm:$0xff] (%p442_p6) }
  0x72   : > { %v376_v19 = vsub.f32 1.0, %v696_v11 }
  0x73   : > { %v377_v13 = vmul.f32 %v375_v12, %v375_v12  ;;  %v474_v27 = vld [vmem:[#allocation4] sm:$0xff] (%p442_p6)  ;;  %v464_v30 = vld [vmem:[#allocation3 + $0x18] sm:$0x1] (%p442_p6) }
  0x74   : > { %v378_v21 = vmul.f32 %v376_v19, %v376_v19  ;;  %478 = vadd.xlane.f32.xlu1 (%p442_p6), %v474_v27  ;;  %v471_v34 = vsel (%p442_p6), %vm221_vm0, %v464_v30, 0.0 }
  0x75   : > { %v379_v4 = vmul.f32 %v377_v13, %v919_v26  ;;  %v475_v8 = vld [vmem:[#allocation4 + $0x8] sm:$0xff] (%p442_p6)  ;;  %467 = vadd.xlane.f32.xlu0 (%p442_p6), %v462_v32 }
  0x76   : > { %v380_v23 = vmul.f32 %v378_v21, %v924_v31  ;;  %446 = sbr.rel (!%p442_p6) target bundleno = 500 (0x1f4), region = 36  ;;  %v476_v29 = vld [vmem:[#allocation4 + $0x10] sm:$0xff] (%p442_p6) }
  0x77   : > { %v477_v26 = vld [vmem:[#allocation4 + $0x18] sm:$0x1] (%p442_p6) }
  0x78   : > { %v381_v25 = vadd.f32 %v380_v23, %v379_v4  ;;  %480 = vadd.xlane.f32.xlu1 (%p442_p6), %v475_v8  ;;  %v484_v31 = vsel (%p442_p6), %vm221_vm0, %v477_v26, 0.0 }
  0x79   : > { %469 = vadd.xlane.f32.xlu0 (%p442_p6), %v463_v33 }
  0x7a   : > { %v416_v7 = vadd.f32 %v415_v5, %v381_v25 }
  0x7c   : > { %417 = vst [vmem:[#allocation2] sm:$0x1] %v416_v7  ;;  %482 = vadd.xlane.f32.xlu1 (%p442_p6), %v476_v29 }
  0x7d   : > { %472 = vadd.xlane.f32.xlu0 %v471_v34 }
  0x80   : > { %485 = vadd.xlane.f32.xlu1 %v484_v31 }
  0x83   : > { %v447_v62 = vld [vmem:[#allocation2] sm:$0x1] }
  0x84   : > { %v448_v1 = vsel %vm221_vm0, %v447_v62, 0.0 }
  0x85   : > { %449 = vadd.xlane.f32.xlu0 %v448_v1 }
  0xfe   : > { %v466_v35 = vpop.xlane.xlu0 %465 }
  0xff   : > { %v491_v50 = vadd.f32 1e-06, %v466_v35 }
 0x101   : > { %v479_v6 = vpop.xlane.xlu1 %478 }
 0x102   : > { %v487_v10 = vsub.f32 %v479_v6, %v466_v35  ;;  %v468_v37 = vpop.xlane.xlu0 %467 }
 0x103   : > { %v492_v48 = vadd.f32 1e-06, %v468_v37 }
 0x104   : > { %v495_v36 = vadd.f32 1e-06, %v487_v10 }
 0x105   : > { %v481_v3 = vpop.xlane.xlu1 %480 }
 0x106   : > { %v488_v20 = vsub.f32 %v481_v3, %v468_v37  ;;  %697 = vrcp.f32 %v495_v36  ;;  %v470_v40 = vpop.xlane.xlu0 %469 }
 0x107   : > { %v493_v24 = vadd.f32 1e-06, %v470_v40 }
 0x108   : > { %v496_v38 = vadd.f32 1e-06, %v488_v20 }
 0x109   : > { %v483_v39 = vpop.xlane.xlu1 %482 }
 0x10a   : > { %699 = vrcp.f32 %v496_v38  ;;  %v489_v41 = vsub.f32 %v483_v39, %v470_v40  ;;  %v473_v44 = vpop.xlane.xlu0 %472 }
 0x10b   : > { %v494_v55 = vadd.f32 1e-06, %v473_v44 }
 0x10c   : > { %v497_v42 = vadd.f32 1e-06, %v489_v41 }
 0x10d   : > { %v486_v43 = vpop.xlane.xlu1 %485 }
 0x10e   : > { %701 = vrcp.f32 %v497_v42  ;;  %v490_v45 = vsub.f32 %v486_v43, %v473_v44 }
 0x110   : > { %v498_v46 = vadd.f32 1e-06, %v490_v45  ;;  %v698_v47 = vpop.eup %697 }
 0x111   : > { %v500_v51 = vmul.f32 %v698_v47, %v491_v50 }
 0x112   : > { %703 = vrcp.f32 %v498_v46  ;;  %v450_v15 = vpop.xlane.xlu0 %449 }
 0x113   : > { %v509_v54 = vsel %vm508_vm9, %v500_v51, 0.0  ;;  %v451_v57 = vrot.slane %v450_v15, 4 }
 0x114   : > { %v700_v49 = vpop.eup %699 }
 0x115   : > { %v502_v22 = vmul.f32 %v700_v49, %v492_v48  ;;  %v452_v16 = vadd.f32 %v451_v57, %v450_v15 }
 0x117   : > { %v510_v56 = vsel %vm508_vm9, %v502_v22, 0.0  ;;  %v453_v59 = vrot.slane %v452_v16, 2 }
 0x118   : > { %v702_v52 = vpop.eup %701  ;;  %v511_v61 = vadd.f32 %v510_v56, %v509_v54 }
 0x119   : > { %v504_v53 = vmul.f32 %v702_v52, %v493_v24  ;;  %v454_v17 = vadd.f32 %v453_v59, %v452_v16 }
 0x11b   : > { %v512_v58 = vsel %vm508_vm9, %v504_v53, 0.0  ;;  %v455_v18 = vrot.slane %v454_v17, 1 }
 0x11c   : > { %v704_v60 = vpop.eup %703  ;;  %v513_v9 = vadd.f32 %v512_v58, %v511_v61 }
 0x11d   : > { %v506_v0 = vmul.f32 %v704_v60, %v494_v55  ;;  %v456_v63 = vadd.f32 %v455_v18, %v454_v17 }
 0x11f   : > { %v515_v14 = vsel %vm514_vm10, %v506_v0, 0.0  ;;  %632 = vpush %v456_v63 }
 0x120   : > { %v516_v2 = vadd.f32 %v515_v14, %v513_v9 }
 0x122   : > { %517 = vadd.xlane.f32.xlu1 %v516_v2 }
 0x150   : > { %s633_s23 = spop %632 }
 0x151   : > { %s460_s24 = smul.f32 0.001953125, %s633_s23 }
 0x153   : > { %s507_s26 = sadd.f32 1.0, %s460_s24 }
 0x1af   : > { %v518_v11 = vpop.xlane.xlu1 %517 }
 0x1b0   : > { %v519_v12 = vrot.slane %v518_v11, 4 }
 0x1b2   : > { %v520_v19 = vadd.f32 %v519_v12, %v518_v11 }
 0x1b4   : > { %v521_v13 = vrot.slane %v520_v19, 2 }
 0x1b6   : > { %v522_v21 = vadd.f32 %v521_v13, %v520_v19 }
 0x1b8   : > { %v523_v4 = vrot.slane %v522_v21, 1 }
 0x1ba   : > { %v524_v23 = vadd.f32 %v523_v4, %v522_v21 }
 0x1bc   : > { %634 = vpush %v524_v23 }
 0x1ed   : > { %s635_s25 = spop %634 }
 0x1ee   : > { %s528_s27 = smul.f32 0.04, %s635_s25 }
 0x1f0   : > { %s529_s28 = ssub.f32 %s507_s26, %s528_s27 }
 0x1f2   : > { %v530_v5 = vstv %s529_s28 }
 0x1f3   : > { %531 = vst.msk [vmem:[#allocation5] sm:$0x1] %vm514_vm10, %v530_v5 }
 0x1f4 PF: > { %p960_p7 = scmp.eq.s32.totalorder %s608_s12, 1  ;;  %s761_s30 = smov [#allocation5]  }
 0x1f5   : > { %s539_s3 = sshll.u32 %s761_s30, 4  ;;  %s540_s3 = int_to_ptr.vmem [resolvable:$true] %s539_s3 }
 0x1f6   : > { %s705_s4 = scalar_lea.vmem %s540_s3, 16  ;;  %s711_s5 = scalar_lea.vmem %s540_s3, 32 }
 0x1f7   : > { %p706_p8 = scmp.ne.s32.totalorder %s540_s3, %s705_s4  ;;  %p712_p11 = scmp.lt.s32.totalorder %s540_s3, %s540_s3 }
 0x1f8   : > { %p713_p12 = scmp.lt.s32.totalorder %s711_s5, %s705_s4 }
 0x1f9   : > { %p707_p9 = pnand %p706_p8, %p960_p7 }
 0x1fa   : > { %p714_p13 = por %p713_p12, %p712_p11 }
 0x1fb   : > { %p708_p10 = pneg %p707_p9 }
 0x1fd   : > { %p715_p0 = pnand %p714_p13, %p708_p10 }
 0x1ff   : > { %718 = shalt.err (!%p715_p0)
}
 0x200   : > { %s719_s8 = scalar_lea.hbm %s997_s2, 16 }
 0x201   : > { %p720_p1 = scmp.ne.s32.totalorder %s997_s2, %s719_s8  ;;  %p725_p4 = scmp.lt.u32.totalorder %s719_s8, %s997_s2 }
 0x203   : > { %p721_p2 = pnand %p720_p1, %p960_p7 }
 0x205   : > { %p722_p3 = pneg %p721_p2 }
 0x207   : > { %p727_p5 = pnand %p725_p4, %p722_p3 }
 0x209   : > { %730 = shalt.err (!%p727_p5)
}
 0x20a   : > { %637 = dma.vmem_to_hbm [thread:$0]  (%p960_p7), %s540_s3, 16, %s997_s2, [#allocation6]  }
 0x20b   : > { %744 = dma.done.wait (%p960_p7), [#allocation6], 16  }
 0x20c   : > { %746 = vsyncadd (%p960_p7), [#allocation6], 4294967280 }
 0x20d PF: > { %s13_s11 = sadd.s32 1, %s757_s11   ;;  %s999_s9 = smov %s753_s10 }
 0x20e   : > { %p10_p6 = scmp.ge.s32.totalorder %s13_s11, 4   ;;  %s1000_s10 = smov %s1002_s13 }
 0x210   :  { %12 = sbr.rel (!%p10_p6) target bundleno = 2 (0x2), region = 66 }
 0x217   :  { %552 = vsyncpa [#allocation6], 1 }
 0x218   :  { %554 = vsyncpa [#allocation6 + $0x1], 1 }

</bundles_post_ra>
